<compile_context>
chip_gen: v6e
topology: v6e:2x2x1
jax: 0.10.0
libtpu: 0.0.40
codegen_flags: <defaults>
</compile_context>

<pallas_src>
from functools import partial

import jax
import jax.numpy as jnp
from jax import lax
from jax.experimental import pallas as pl
from jax.experimental.pallas import tpu as pltpu


def _fcn_head_kernel(x_ref, yy_ref, xx_ref, w3_ref, scale_ref, bias_ref,
                     w1_ref, b1_ref, feat_ref, out_ref, *, H, W):
    # x_ref:    (1, Cin, S)     one batch element, spatial flattened on lanes
    # yy_ref:   (1, S) int32    row index of each spatial position
    # xx_ref:   (1, S) int32    col index of each spatial position
    # w3_ref:   (9, Cmid, Cin)  3x3 conv taps (tap-major)
    # scale_ref/bias_ref: (Cmid, 1)   folded BatchNorm scale / bias
    # w1_ref:   (Cout, Cmid)    1x1 conv weight
    # b1_ref:   (Cout, 1)       1x1 conv bias
    # feat_ref: (1, Cmid, S)
    # out_ref:  (1, Cout, S)
    S = H * W
    Cmid = feat_ref.shape[1]

    x = x_ref[0]                      # (Cin, S), lane-dense
    yy = yy_ref[...]                  # (1, S)
    xx = xx_ref[...]                  # (1, S)

    # validity of the shifted source pixel (zero-padding halo of the 3x3 conv)
    y_ok_lo = yy >= 1                 # source row y-1 exists   (dy == 0)
    y_ok_hi = yy <= H - 2             # source row y+1 exists   (dy == 2)
    x_ok_lo = xx >= 1                 # source col x-1 exists   (dx == 0)
    x_ok_hi = xx <= W - 2             # source col x+1 exists   (dx == 2)

    acc = jnp.zeros((Cmid, S), jnp.float32)
    for dy in range(3):
        for dx in range(3):
            t = dy * 3 + dx
            # (Cmid, Cin) @ (Cin, S) -> (Cmid, S): lane-dense MXU matmul
            r = jnp.dot(w3_ref[t], x, preferred_element_type=jnp.float32)
            # fold the spatial shift of this tap into a lane rotation (XLU)
            shift = (dy - 1) * W + (dx - 1)
            if shift != 0:
                r = pltpu.roll(r, (-shift) % S, axis=1)
            # zero the positions whose source pixel lies outside the image
            mask = None
            if dy == 0:
                mask = y_ok_lo
            elif dy == 2:
                mask = y_ok_hi
            if dx == 0:
                mask = x_ok_lo if mask is None else (mask & x_ok_lo)
            elif dx == 2:
                mask = x_ok_hi if mask is None else (mask & x_ok_hi)
            if mask is not None:
                r = jnp.where(mask, r, 0.0)
            acc = acc + r

    # folded BatchNorm (eval) + ReLU; Dropout(0.1) is identity at inference
    feat = jnp.maximum(acc * scale_ref[...] + bias_ref[...], 0.0)   # (Cmid, S)

    # 1x1 conv = channel matmul + bias
    out = jnp.dot(w1_ref[...], feat,
                  preferred_element_type=jnp.float32) + b1_ref[...]  # (Cout, S)

    feat_ref[0] = feat.astype(feat_ref.dtype)
    out_ref[0] = out.astype(out_ref.dtype)


def fcn_head_pallas(x_nchw, w3, gamma, beta, run_mean, run_var, w1, b1, eps=1e-5):
    """x_nchw: (N, Cin, H, W) float32.  Returns (feat, out) in NCHW."""
    N, Cin, H, W = x_nchw.shape
    Cmid = w3.shape[0]          # w3: (Cmid, Cin, 3, 3)  (PyTorch OIHW)
    Cout = w1.shape[0]          # w1: (Cout, Cmid, 1, 1)
    S = H * W

    # --- glue (plain JAX): only free reshapes + tiny parameter folding ---
    x = x_nchw.reshape(N, Cin, S)                                   # contiguous
    # OIHW -> (tap, Cmid, Cin), tap = dy*3 + dx
    w3_k = jnp.transpose(w3, (2, 3, 0, 1)).reshape(9, Cmid, Cin)
    inv_std = gamma / jnp.sqrt(run_var + eps)
    bn_scale = inv_std.reshape(Cmid, 1)
    bn_bias = (beta - run_mean * inv_std).reshape(Cmid, 1)
    w1_m = w1.reshape(Cout, Cmid)
    b1_m = b1.reshape(Cout, 1)
    # per-position (row, col) planes used for the conv halo masks (tiny consts)
    yy = jnp.repeat(jnp.arange(H, dtype=jnp.int32), W)[None, :]     # (1, S)
    xx = jnp.tile(jnp.arange(W, dtype=jnp.int32), H)[None, :]       # (1, S)

    kernel = partial(_fcn_head_kernel, H=H, W=W)

    feat_flat, out_flat = pl.pallas_call(
        kernel,
        out_shape=(jax.ShapeDtypeStruct((N, Cmid, S), jnp.float32),
                   jax.ShapeDtypeStruct((N, Cout, S), jnp.float32)),
        grid_spec=pltpu.PrefetchScalarGridSpec(
            num_scalar_prefetch=0,
            grid=(N,),
            in_specs=[
                pl.BlockSpec((1, Cin, S), lambda n: (n, 0, 0)),
                pl.BlockSpec((1, S), lambda n: (0, 0)),
                pl.BlockSpec((1, S), lambda n: (0, 0)),
                pl.BlockSpec((9, Cmid, Cin), lambda n: (0, 0, 0)),
                pl.BlockSpec((Cmid, 1), lambda n: (0, 0)),
                pl.BlockSpec((Cmid, 1), lambda n: (0, 0)),
                pl.BlockSpec((Cout, Cmid), lambda n: (0, 0)),
                pl.BlockSpec((Cout, 1), lambda n: (0, 0)),
            ],
            out_specs=[
                pl.BlockSpec((1, Cmid, S), lambda n: (n, 0, 0)),
                pl.BlockSpec((1, Cout, S), lambda n: (n, 0, 0)),
            ],
        ),
        compiler_params=pltpu.CompilerParams(
            dimension_semantics=("parallel",),
            vmem_limit_bytes=32 * 1024 * 1024,
        ),
    )(x, yy, xx, w3_k, bn_scale, bn_bias, w1_m, b1_m)

    feat = feat_flat.reshape(N, Cmid, H, W)
    out = out_flat.reshape(N, Cout, H, W)
    return feat, out


def _reference(x_nchw, w3, gamma, beta, run_mean, run_var, w1, b1, eps=1e-5):
    """Pure-JAX NCHW reference of the PyTorch forward (eval mode)."""
    feat = lax.conv_general_dilated(
        x_nchw, w3, window_strides=(1, 1), padding=((1, 1), (1, 1)),
        dimension_numbers=("NCHW", "OIHW", "NCHW"))
    scale = (gamma / jnp.sqrt(run_var + eps)).reshape(1, -1, 1, 1)
    shift = (beta - run_mean * gamma / jnp.sqrt(run_var + eps)).reshape(1, -1, 1, 1)
    feat = jnp.maximum(feat * scale + shift, 0.0)
    out = lax.conv_general_dilated(
        feat, w1, window_strides=(1, 1), padding=((0, 0), (0, 0)),
        dimension_numbers=("NCHW", "OIHW", "NCHW"))
    out = out + b1.reshape(1, -1, 1, 1)
    return feat, out


if __name__ == "__main__":
    # Small shapes consistent with FCNHead(in_channels=16, channels=8)
    N, Cin, H, W = 2, 16, 16, 16
    Cmid = Cin // 4          # inter_channels
    Cout = 8

    key = jax.random.PRNGKey(0)
    k = jax.random.split(key, 6)
    x = jax.random.normal(k[0], (N, Cin, H, W), jnp.float32)
    w3 = 0.1 * jax.random.normal(k[1], (Cmid, Cin, 3, 3), jnp.float32)
    w1 = 0.1 * jax.random.normal(k[2], (Cout, Cmid, 1, 1), jnp.float32)
    b1 = 0.05 * jax.random.normal(k[3], (Cout,), jnp.float32)
    gamma = 1.0 + 0.1 * jax.random.normal(k[4], (Cmid,), jnp.float32)
    beta = 0.1 * jax.random.normal(k[5], (Cmid,), jnp.float32)
    run_mean = 0.05 * jnp.arange(Cmid, dtype=jnp.float32)
    run_var = 1.0 + 0.1 * jnp.arange(Cmid, dtype=jnp.float32)

    feat, out = fcn_head_pallas(x, w3, gamma, beta, run_mean, run_var, w1, b1)
    jax.block_until_ready((feat, out))

    feat_ref, out_ref = _reference(x, w3, gamma, beta, run_mean, run_var, w1, b1)
    assert feat.shape == (N, Cmid, H, W) and out.shape == (N, Cout, H, W)
    assert jnp.allclose(feat, feat_ref, atol=1e-4, rtol=1e-4)
    assert jnp.allclose(out, out_ref, atol=1e-4, rtol=1e-4)
    print("KERNEL_OK")
</pallas_src>

<mosaic_0001>
module attributes {stable_mosaic.version = 11 : i64} {
  func.func @_fcn_head_kernel(%arg0: i32, %arg1: memref<1x16x256xf32, #tpu.memory_space<vmem>>, %arg2: memref<1x256xi32, #tpu.memory_space<vmem>>, %arg3: memref<1x256xi32, #tpu.memory_space<vmem>>, %arg4: memref<9x4x16xf32, #tpu.memory_space<vmem>>, %arg5: memref<4x1xf32, #tpu.memory_space<vmem>>, %arg6: memref<4x1xf32, #tpu.memory_space<vmem>>, %arg7: memref<8x4xf32, #tpu.memory_space<vmem>>, %arg8: memref<8x1xf32, #tpu.memory_space<vmem>>, %arg9: memref<1x4x256xf32, #tpu.memory_space<vmem>>, %arg10: memref<1x8x256xf32, #tpu.memory_space<vmem>>) attributes {dimension_semantics = [#tpu.dimension_semantics<parallel>], iteration_bounds = array<i64: 2>, scalar_prefetch = 0 : i64, scratch_operands = 0 : i64, tpu.core_type = #tpu.core_type<tc>, window_params = [{transform_indices = @transform_0, window_bounds = array<i64: 1, 16, 256>}, {pipeline_mode = #tpu.pipeline_mode<synchronous>, transform_indices = @transform_1, window_bounds = array<i64: 1, 256>}, {pipeline_mode = #tpu.pipeline_mode<synchronous>, transform_indices = @transform_2, window_bounds = array<i64: 1, 256>}, {pipeline_mode = #tpu.pipeline_mode<synchronous>, transform_indices = @transform_3, window_bounds = array<i64: 9, 4, 16>}, {pipeline_mode = #tpu.pipeline_mode<synchronous>, transform_indices = @transform_4, window_bounds = array<i64: 4, 1>}, {pipeline_mode = #tpu.pipeline_mode<synchronous>, transform_indices = @transform_5, window_bounds = array<i64: 4, 1>}, {pipeline_mode = #tpu.pipeline_mode<synchronous>, transform_indices = @transform_6, window_bounds = array<i64: 8, 4>}, {pipeline_mode = #tpu.pipeline_mode<synchronous>, transform_indices = @transform_7, window_bounds = array<i64: 8, 1>}, {transform_indices = @transform_8, window_bounds = array<i64: 1, 4, 256>}, {transform_indices = @transform_9, window_bounds = array<i64: 1, 8, 256>}]} {
    %c0 = arith.constant 0 : index
    %c0_0 = arith.constant 0 : index
    %c0_1 = arith.constant 0 : index
    %0 = vector.load %arg1[%c0, %c0_0, %c0_1] : memref<1x16x256xf32, #tpu.memory_space<vmem>>, vector<1x16x256xf32>
    %1 = vector.shape_cast %0 : vector<1x16x256xf32> to vector<16x256xf32>
    %c0_2 = arith.constant 0 : index
    %c0_3 = arith.constant 0 : index
    %2 = vector.load %arg2[%c0_2, %c0_3] : memref<1x256xi32, #tpu.memory_space<vmem>>, vector<1x256xi32>
    %c0_4 = arith.constant 0 : index
    %c0_5 = arith.constant 0 : index
    %3 = vector.load %arg3[%c0_4, %c0_5] : memref<1x256xi32, #tpu.memory_space<vmem>>, vector<1x256xi32>
    %c1_i32 = arith.constant 1 : i32
    %4 = vector.broadcast %c1_i32 : i32 to vector<1x256xi32>
    %5 = arith.cmpi sge, %2, %4 : vector<1x256xi32>
    %c14_i32 = arith.constant 14 : i32
    %6 = vector.broadcast %c14_i32 : i32 to vector<1x256xi32>
    %7 = arith.cmpi sle, %2, %6 : vector<1x256xi32>
    %c1_i32_6 = arith.constant 1 : i32
    %8 = vector.broadcast %c1_i32_6 : i32 to vector<1x256xi32>
    %9 = arith.cmpi sge, %3, %8 : vector<1x256xi32>
    %c14_i32_7 = arith.constant 14 : i32
    %10 = vector.broadcast %c14_i32_7 : i32 to vector<1x256xi32>
    %11 = arith.cmpi sle, %3, %10 : vector<1x256xi32>
    %cst = arith.constant 0.000000e+00 : f32
    %12 = vector.broadcast %cst : f32 to vector<4x256xf32>
    %c0_8 = arith.constant 0 : index
    %c0_9 = arith.constant 0 : index
    %c0_10 = arith.constant 0 : index
    %13 = vector.load %arg4[%c0_8, %c0_9, %c0_10] : memref<9x4x16xf32, #tpu.memory_space<vmem>>, vector<1x4x16xf32>
    %14 = vector.shape_cast %13 : vector<1x4x16xf32> to vector<4x16xf32>
    %cst_11 = arith.constant dense<0.000000e+00> : vector<4x256xf32>
    %15 = tpu.matmul %14, %1, %cst_11 {dimension_numbers = #tpu.dot_dimension_numbers<[1], [0], [0], [1], [0, 0, 1, 1], [], []>} : vector<4x16xf32>, vector<16x256xf32>, vector<4x256xf32> -> vector<4x256xf32>
    %c17_i32 = arith.constant 17 : i32
    %16 = tpu.dynamic_rotate %15 by %c17_i32 dim 1 : vector<4x256xf32>, i32 -> vector<4x256xf32>
    %17 = arith.andi %5, %9 : vector<1x256xi1>
    %cst_12 = arith.constant 0.000000e+00 : f32
    %18 = vector.shape_cast %17 : vector<1x256xi1> to vector<1x256xi1>
    %19 = vector.broadcast %18 : vector<1x256xi1> to vector<4x256xi1>
    %20 = vector.broadcast %cst_12 : f32 to vector<4x256xf32>
    %21 = arith.select %19, %16, %20 : vector<4x256xi1>, vector<4x256xf32>
    %22 = arith.addf %12, %21 : vector<4x256xf32>
    %c1 = arith.constant 1 : index
    %c0_13 = arith.constant 0 : index
    %c0_14 = arith.constant 0 : index
    %23 = vector.load %arg4[%c1, %c0_13, %c0_14] : memref<9x4x16xf32, #tpu.memory_space<vmem>>, vector<1x4x16xf32>
    %24 = vector.shape_cast %23 : vector<1x4x16xf32> to vector<4x16xf32>
    %cst_15 = arith.constant dense<0.000000e+00> : vector<4x256xf32>
    %25 = tpu.matmul %24, %1, %cst_15 {dimension_numbers = #tpu.dot_dimension_numbers<[1], [0], [0], [1], [0, 0, 1, 1], [], []>} : vector<4x16xf32>, vector<16x256xf32>, vector<4x256xf32> -> vector<4x256xf32>
    %c16_i32 = arith.constant 16 : i32
    %26 = tpu.dynamic_rotate %25 by %c16_i32 dim 1 : vector<4x256xf32>, i32 -> vector<4x256xf32>
    %cst_16 = arith.constant 0.000000e+00 : f32
    %27 = vector.shape_cast %5 : vector<1x256xi1> to vector<1x256xi1>
    %28 = vector.broadcast %27 : vector<1x256xi1> to vector<4x256xi1>
    %29 = vector.broadcast %cst_16 : f32 to vector<4x256xf32>
    %30 = arith.select %28, %26, %29 : vector<4x256xi1>, vector<4x256xf32>
    %31 = arith.addf %22, %30 : vector<4x256xf32>
    %c2 = arith.constant 2 : index
    %c0_17 = arith.constant 0 : index
    %c0_18 = arith.constant 0 : index
    %32 = vector.load %arg4[%c2, %c0_17, %c0_18] : memref<9x4x16xf32, #tpu.memory_space<vmem>>, vector<1x4x16xf32>
    %33 = vector.shape_cast %32 : vector<1x4x16xf32> to vector<4x16xf32>
    %cst_19 = arith.constant dense<0.000000e+00> : vector<4x256xf32>
    %34 = tpu.matmul %33, %1, %cst_19 {dimension_numbers = #tpu.dot_dimension_numbers<[1], [0], [0], [1], [0, 0, 1, 1], [], []>} : vector<4x16xf32>, vector<16x256xf32>, vector<4x256xf32> -> vector<4x256xf32>
    %c15_i32 = arith.constant 15 : i32
    %35 = tpu.dynamic_rotate %34 by %c15_i32 dim 1 : vector<4x256xf32>, i32 -> vector<4x256xf32>
    %36 = arith.andi %5, %11 : vector<1x256xi1>
    %cst_20 = arith.constant 0.000000e+00 : f32
    %37 = vector.shape_cast %36 : vector<1x256xi1> to vector<1x256xi1>
    %38 = vector.broadcast %37 : vector<1x256xi1> to vector<4x256xi1>
    %39 = vector.broadcast %cst_20 : f32 to vector<4x256xf32>
    %40 = arith.select %38, %35, %39 : vector<4x256xi1>, vector<4x256xf32>
    %41 = arith.addf %31, %40 : vector<4x256xf32>
    %c3 = arith.constant 3 : index
    %c0_21 = arith.constant 0 : index
    %c0_22 = arith.constant 0 : index
    %42 = vector.load %arg4[%c3, %c0_21, %c0_22] : memref<9x4x16xf32, #tpu.memory_space<vmem>>, vector<1x4x16xf32>
    %43 = vector.shape_cast %42 : vector<1x4x16xf32> to vector<4x16xf32>
    %cst_23 = arith.constant dense<0.000000e+00> : vector<4x256xf32>
    %44 = tpu.matmul %43, %1, %cst_23 {dimension_numbers = #tpu.dot_dimension_numbers<[1], [0], [0], [1], [0, 0, 1, 1], [], []>} : vector<4x16xf32>, vector<16x256xf32>, vector<4x256xf32> -> vector<4x256xf32>
    %c1_i32_24 = arith.constant 1 : i32
    %45 = tpu.dynamic_rotate %44 by %c1_i32_24 dim 1 : vector<4x256xf32>, i32 -> vector<4x256xf32>
    %cst_25 = arith.constant 0.000000e+00 : f32
    %46 = vector.shape_cast %9 : vector<1x256xi1> to vector<1x256xi1>
    %47 = vector.broadcast %46 : vector<1x256xi1> to vector<4x256xi1>
    %48 = vector.broadcast %cst_25 : f32 to vector<4x256xf32>
    %49 = arith.select %47, %45, %48 : vector<4x256xi1>, vector<4x256xf32>
    %50 = arith.addf %41, %49 : vector<4x256xf32>
    %c4 = arith.constant 4 : index
    %c0_26 = arith.constant 0 : index
    %c0_27 = arith.constant 0 : index
    %51 = vector.load %arg4[%c4, %c0_26, %c0_27] : memref<9x4x16xf32, #tpu.memory_space<vmem>>, vector<1x4x16xf32>
    %52 = vector.shape_cast %51 : vector<1x4x16xf32> to vector<4x16xf32>
    %cst_28 = arith.constant dense<0.000000e+00> : vector<4x256xf32>
    %53 = tpu.matmul %52, %1, %cst_28 {dimension_numbers = #tpu.dot_dimension_numbers<[1], [0], [0], [1], [0, 0, 1, 1], [], []>} : vector<4x16xf32>, vector<16x256xf32>, vector<4x256xf32> -> vector<4x256xf32>
    %54 = arith.addf %50, %53 : vector<4x256xf32>
    %c5 = arith.constant 5 : index
    %c0_29 = arith.constant 0 : index
    %c0_30 = arith.constant 0 : index
    %55 = vector.load %arg4[%c5, %c0_29, %c0_30] : memref<9x4x16xf32, #tpu.memory_space<vmem>>, vector<1x4x16xf32>
    %56 = vector.shape_cast %55 : vector<1x4x16xf32> to vector<4x16xf32>
    %cst_31 = arith.constant dense<0.000000e+00> : vector<4x256xf32>
    %57 = tpu.matmul %56, %1, %cst_31 {dimension_numbers = #tpu.dot_dimension_numbers<[1], [0], [0], [1], [0, 0, 1, 1], [], []>} : vector<4x16xf32>, vector<16x256xf32>, vector<4x256xf32> -> vector<4x256xf32>
    %c255_i32 = arith.constant 255 : i32
    %58 = tpu.dynamic_rotate %57 by %c255_i32 dim 1 : vector<4x256xf32>, i32 -> vector<4x256xf32>
    %cst_32 = arith.constant 0.000000e+00 : f32
    %59 = vector.shape_cast %11 : vector<1x256xi1> to vector<1x256xi1>
    %60 = vector.broadcast %59 : vector<1x256xi1> to vector<4x256xi1>
    %61 = vector.broadcast %cst_32 : f32 to vector<4x256xf32>
    %62 = arith.select %60, %58, %61 : vector<4x256xi1>, vector<4x256xf32>
    %63 = arith.addf %54, %62 : vector<4x256xf32>
    %c6 = arith.constant 6 : index
    %c0_33 = arith.constant 0 : index
    %c0_34 = arith.constant 0 : index
    %64 = vector.load %arg4[%c6, %c0_33, %c0_34] : memref<9x4x16xf32, #tpu.memory_space<vmem>>, vector<1x4x16xf32>
    %65 = vector.shape_cast %64 : vector<1x4x16xf32> to vector<4x16xf32>
    %cst_35 = arith.constant dense<0.000000e+00> : vector<4x256xf32>
    %66 = tpu.matmul %65, %1, %cst_35 {dimension_numbers = #tpu.dot_dimension_numbers<[1], [0], [0], [1], [0, 0, 1, 1], [], []>} : vector<4x16xf32>, vector<16x256xf32>, vector<4x256xf32> -> vector<4x256xf32>
    %c241_i32 = arith.constant 241 : i32
    %67 = tpu.dynamic_rotate %66 by %c241_i32 dim 1 : vector<4x256xf32>, i32 -> vector<4x256xf32>
    %68 = arith.andi %7, %9 : vector<1x256xi1>
    %cst_36 = arith.constant 0.000000e+00 : f32
    %69 = vector.shape_cast %68 : vector<1x256xi1> to vector<1x256xi1>
    %70 = vector.broadcast %69 : vector<1x256xi1> to vector<4x256xi1>
    %71 = vector.broadcast %cst_36 : f32 to vector<4x256xf32>
    %72 = arith.select %70, %67, %71 : vector<4x256xi1>, vector<4x256xf32>
    %73 = arith.addf %63, %72 : vector<4x256xf32>
    %c7 = arith.constant 7 : index
    %c0_37 = arith.constant 0 : index
    %c0_38 = arith.constant 0 : index
    %74 = vector.load %arg4[%c7, %c0_37, %c0_38] : memref<9x4x16xf32, #tpu.memory_space<vmem>>, vector<1x4x16xf32>
    %75 = vector.shape_cast %74 : vector<1x4x16xf32> to vector<4x16xf32>
    %cst_39 = arith.constant dense<0.000000e+00> : vector<4x256xf32>
    %76 = tpu.matmul %75, %1, %cst_39 {dimension_numbers = #tpu.dot_dimension_numbers<[1], [0], [0], [1], [0, 0, 1, 1], [], []>} : vector<4x16xf32>, vector<16x256xf32>, vector<4x256xf32> -> vector<4x256xf32>
    %c240_i32 = arith.constant 240 : i32
    %77 = tpu.dynamic_rotate %76 by %c240_i32 dim 1 : vector<4x256xf32>, i32 -> vector<4x256xf32>
    %cst_40 = arith.constant 0.000000e+00 : f32
    %78 = vector.shape_cast %7 : vector<1x256xi1> to vector<1x256xi1>
    %79 = vector.broadcast %78 : vector<1x256xi1> to vector<4x256xi1>
    %80 = vector.broadcast %cst_40 : f32 to vector<4x256xf32>
    %81 = arith.select %79, %77, %80 : vector<4x256xi1>, vector<4x256xf32>
    %82 = arith.addf %73, %81 : vector<4x256xf32>
    %c8 = arith.constant 8 : index
    %c0_41 = arith.constant 0 : index
    %c0_42 = arith.constant 0 : index
    %83 = vector.load %arg4[%c8, %c0_41, %c0_42] : memref<9x4x16xf32, #tpu.memory_space<vmem>>, vector<1x4x16xf32>
    %84 = vector.shape_cast %83 : vector<1x4x16xf32> to vector<4x16xf32>
    %cst_43 = arith.constant dense<0.000000e+00> : vector<4x256xf32>
    %85 = tpu.matmul %84, %1, %cst_43 {dimension_numbers = #tpu.dot_dimension_numbers<[1], [0], [0], [1], [0, 0, 1, 1], [], []>} : vector<4x16xf32>, vector<16x256xf32>, vector<4x256xf32> -> vector<4x256xf32>
    %c239_i32 = arith.constant 239 : i32
    %86 = tpu.dynamic_rotate %85 by %c239_i32 dim 1 : vector<4x256xf32>, i32 -> vector<4x256xf32>
    %87 = arith.andi %7, %11 : vector<1x256xi1>
    %cst_44 = arith.constant 0.000000e+00 : f32
    %88 = vector.shape_cast %87 : vector<1x256xi1> to vector<1x256xi1>
    %89 = vector.broadcast %88 : vector<1x256xi1> to vector<4x256xi1>
    %90 = vector.broadcast %cst_44 : f32 to vector<4x256xf32>
    %91 = arith.select %89, %86, %90 : vector<4x256xi1>, vector<4x256xf32>
    %92 = arith.addf %82, %91 : vector<4x256xf32>
    %c0_45 = arith.constant 0 : index
    %c0_46 = arith.constant 0 : index
    %93 = vector.load %arg5[%c0_45, %c0_46] : memref<4x1xf32, #tpu.memory_space<vmem>>, vector<4x1xf32>
    %94 = vector.broadcast %93 : vector<4x1xf32> to vector<4x256xf32>
    %95 = arith.mulf %92, %94 : vector<4x256xf32>
    %c0_47 = arith.constant 0 : index
    %c0_48 = arith.constant 0 : index
    %96 = vector.load %arg6[%c0_47, %c0_48] : memref<4x1xf32, #tpu.memory_space<vmem>>, vector<4x1xf32>
    %97 = vector.broadcast %96 : vector<4x1xf32> to vector<4x256xf32>
    %98 = arith.addf %95, %97 : vector<4x256xf32>
    %cst_49 = arith.constant 0.000000e+00 : f32
    %99 = vector.broadcast %cst_49 : f32 to vector<4x256xf32>
    %100 = arith.maximumf %98, %99 : vector<4x256xf32>
    %c0_50 = arith.constant 0 : index
    %c0_51 = arith.constant 0 : index
    %101 = vector.load %arg7[%c0_50, %c0_51] : memref<8x4xf32, #tpu.memory_space<vmem>>, vector<8x4xf32>
    %cst_52 = arith.constant dense<0.000000e+00> : vector<8x256xf32>
    %102 = tpu.matmul %101, %100, %cst_52 {dimension_numbers = #tpu.dot_dimension_numbers<[1], [0], [0], [1], [0, 0, 1, 1], [], []>} : vector<8x4xf32>, vector<4x256xf32>, vector<8x256xf32> -> vector<8x256xf32>
    %c0_53 = arith.constant 0 : index
    %c0_54 = arith.constant 0 : index
    %103 = vector.load %arg8[%c0_53, %c0_54] : memref<8x1xf32, #tpu.memory_space<vmem>>, vector<8x1xf32>
    %104 = vector.broadcast %103 : vector<8x1xf32> to vector<8x256xf32>
    %105 = arith.addf %102, %104 : vector<8x256xf32>
    %c0_55 = arith.constant 0 : index
    %c0_56 = arith.constant 0 : index
    %c0_57 = arith.constant 0 : index
    %106 = vector.load %arg9[%c0_55, %c0_56, %c0_57] : memref<1x4x256xf32, #tpu.memory_space<vmem>>, vector<1x4x256xf32>
    %107 = vector.shape_cast %106 : vector<1x4x256xf32> to vector<4x256xf32>
    %108 = vector.shape_cast %100 : vector<4x256xf32> to vector<1x4x256xf32>
    tpu.vector_store %arg9[%c0_55, %c0_56, %c0_57], %108 {strides = array<i32>} : memref<1x4x256xf32, #tpu.memory_space<vmem>>, vector<1x4x256xf32>,
    %c0_58 = arith.constant 0 : index
    %c0_59 = arith.constant 0 : index
    %c0_60 = arith.constant 0 : index
    %109 = vector.load %arg10[%c0_58, %c0_59, %c0_60] : memref<1x8x256xf32, #tpu.memory_space<vmem>>, vector<1x8x256xf32>
    %110 = vector.shape_cast %109 : vector<1x8x256xf32> to vector<8x256xf32>
    %111 = vector.shape_cast %105 : vector<8x256xf32> to vector<1x8x256xf32>
    tpu.vector_store %arg10[%c0_58, %c0_59, %c0_60], %111 {strides = array<i32>} : memref<1x8x256xf32, #tpu.memory_space<vmem>>, vector<1x8x256xf32>,
    return
  }
  func.func @transform_0(%arg0: i32) -> (i32, i32, i32) {
    %c0_i32 = arith.constant 0 : i32
    %c0_i32_0 = arith.constant 0 : i32
    %c0_i32_1 = arith.constant 0 : i32
    return %arg0, %c0_i32, %c0_i32_0 : i32, i32, i32
  }
  func.func @transform_1(%arg0: i32) -> (i32, i32) {
    %c0_i32 = arith.constant 0 : i32
    %c0_i32_0 = arith.constant 0 : i32
    %c0_i32_1 = arith.constant 0 : i32
    return %c0_i32, %c0_i32_0 : i32, i32
  }
  func.func @transform_2(%arg0: i32) -> (i32, i32) {
    %c0_i32 = arith.constant 0 : i32
    %c0_i32_0 = arith.constant 0 : i32
    %c0_i32_1 = arith.constant 0 : i32
    return %c0_i32, %c0_i32_0 : i32, i32
  }
  func.func @transform_3(%arg0: i32) -> (i32, i32, i32) {
    %c0_i32 = arith.constant 0 : i32
    %c0_i32_0 = arith.constant 0 : i32
    %c0_i32_1 = arith.constant 0 : i32
    %c0_i32_2 = arith.constant 0 : i32
    return %c0_i32, %c0_i32_0, %c0_i32_1 : i32, i32, i32
  }
  func.func @transform_4(%arg0: i32) -> (i32, i32) {
    %c0_i32 = arith.constant 0 : i32
    %c0_i32_0 = arith.constant 0 : i32
    %c0_i32_1 = arith.constant 0 : i32
    return %c0_i32, %c0_i32_0 : i32, i32
  }
  func.func @transform_5(%arg0: i32) -> (i32, i32) {
    %c0_i32 = arith.constant 0 : i32
    %c0_i32_0 = arith.constant 0 : i32
    %c0_i32_1 = arith.constant 0 : i32
    return %c0_i32, %c0_i32_0 : i32, i32
  }
  func.func @transform_6(%arg0: i32) -> (i32, i32) {
    %c0_i32 = arith.constant 0 : i32
    %c0_i32_0 = arith.constant 0 : i32
    %c0_i32_1 = arith.constant 0 : i32
    return %c0_i32, %c0_i32_0 : i32, i32
  }
  func.func @transform_7(%arg0: i32) -> (i32, i32) {
    %c0_i32 = arith.constant 0 : i32
    %c0_i32_0 = arith.constant 0 : i32
    %c0_i32_1 = arith.constant 0 : i32
    return %c0_i32, %c0_i32_0 : i32, i32
  }
  func.func @transform_8(%arg0: i32) -> (i32, i32, i32) {
    %c0_i32 = arith.constant 0 : i32
    %c0_i32_0 = arith.constant 0 : i32
    %c0_i32_1 = arith.constant 0 : i32
    return %arg0, %c0_i32, %c0_i32_0 : i32, i32, i32
  }
  func.func @transform_9(%arg0: i32) -> (i32, i32, i32) {
    %c0_i32 = arith.constant 0 : i32
    %c0_i32_0 = arith.constant 0 : i32
    %c0_i32_1 = arith.constant 0 : i32
    return %arg0, %c0_i32, %c0_i32_0 : i32, i32, i32
  }
}

</mosaic_0001>

<bundles_post_ra>
// kernel: tpu_custom_call.1
= control target key start
LH: loop header
LB: loop body
LE: loop exit
PB: predicated region body
PF: predicated region fallthrough
CT: control target
= control target key end

     0   :  { %s2329_s0 = inlined_call_operand.hbm [shape: f32[2,16,256], index: 0, kind: input, shape index: {}]   ;;  %s2330_s1 = inlined_call_operand.hbm [shape: s32[1,256], index: 1, kind: input, shape index: {}]   ;;  %s2331_s2 = inlined_call_operand.hbm [shape: s32[1,256], index: 2, kind: input, shape index: {}]   ;;  %s2332_s3 = inlined_call_operand.vmem [shape: f32[9,4,16], index: 3, kind: input, shape index: {}]   ;;  %s2333_s4 = inlined_call_operand.vmem [shape: f32[4,1], index: 4, kind: input, shape index: {}]   ;;  %s2334_s5 = inlined_call_operand.vmem [shape: f32[4,1], index: 5, kind: input, shape index: {}]   ;;  %s2335_s6 = inlined_call_operand.vmem [shape: f32[8,4], index: 6, kind: input, shape index: {}]   ;;  %s2336_s7 = inlined_call_operand.vmem [shape: f32[8,1], index: 7, kind: input, shape index: {}]   ;;  %s2337_s8 = inlined_call_operand.hbm [shape: f32[2,4,256], index: 8, kind: output, shape index: {0}]   ;;  %s2338_s9 = inlined_call_operand.hbm [shape: f32[2,8,256], index: 9, kind: output, shape index: {1}]  }
   0x1   :  { %2344 = sst [smem:[#allocation17_spill]] %s2330_s1 }
   0x2   :  { %15 = vsyncpa [#allocation3], 0 }
   0x3   :  { %17 = vsyncpa [#allocation3 + $0x1], 0 }
   0x4   :  { %18 = vsyncpa [#allocation6], 0 }
   0x5   :  { %19 = vsyncpa [#allocation4], 0 }
   0x6   :  { %21 = vsyncpa [#allocation4 + $0x1], 0 }
   0x7   :  { %22 = vsyncpa [#allocation10], 0 }
   0x8   :  { %24 = vsyncpa [#allocation10 + $0x1], 0  ;;  %s1910_s30 = smov 0   ;;  %s1912_s10 = smov 0  }
   0x9   :  { %s1914_s11 = smov 0   ;;  %s1916_s12 = smov 0  }
   0xa LB: > { %2345 = sst [smem:[#allocation15_spill]] %s1837_s11  ;;  %s1931_s13 = sadd.s32 4294967295, %s1841_s12   ;;  %s1841_s12 = sphi %s1916_s12, %s2395_s12   ;;  %s1837_s11 = sphi %s1914_s11, %s2392_s11   ;;  %s1833_s10 = sphi %s1912_s10, %s2394_s10   ;;  %s1829_s30 = sphi %s1910_s30, %s2393_s30  }
   0xb   : > { %s1532_s14 = sadd.s32 4294967294, %s1841_s12   ;;  %s1935_s15 = sadd.s32 1, %s1841_s12  }
   0xc   : > { %s37_s16 = sadd.s32 1, %s1837_s11  ;;  %s34_s17 = ssub.s32 %s1841_s12, %s1935_s15 }
   0xd   : > { %p44_p0 = scmp.ne.s32.totalorder %s1837_s11, %s1833_s10  ;;  %p35_p1 = scmp.eq.s32.totalorder %s34_s17, 0 }
   0xe   : > { %p45_p2 = scmp.eq.s32.totalorder %s1841_s12, 0  ;;  %p50_p3 = scmp.ne.s32.totalorder %s1833_s10, %s1829_s30 }
   0xf   : > { %p2339_p4 = scmp.eq.s32.totalorder %s1931_s13, 0  ;;  %p221_p7 = scmp.eq.s32.totalorder %s1931_s13, 1 }
  0x10   : > { %s1947_s18 = scalar_select %p35_p1, %s1837_s11, %s37_s16  }
  0x11   : > { %p1949_p5 = por %p45_p2, %p44_p0  ;;  %p1955_p6 = por %p2339_p4, %p50_p3 }
  0x12   : > { %2346 = sst [smem:[#allocation16_spill]] %s1947_s18  ;;  %p227_p8 = scmp.eq.s32.totalorder %s1532_s14, 1 }
  0x13   : > { %s2348_s20 = scalar_select %p1955_p6, 1, 0 }
  0x14   : > { %p1533_p9 = scmp.ge.s32.totalorder %s1841_s12, 1  ;;  %p260_p10 = scmp.lt.s32.totalorder %s1841_s12, 3 }
  0x15   : > { %p1962_p11 = por %p221_p7, %p44_p0  ;;  %p1966_p12 = por %p227_p8, %p50_p3 }
  0x16   : > { %p1970_p13 = pnand %p1533_p9, %p260_p10  ;;  %s1843_s24 = smov [#allocation5]  }
  0x17   : > { %s2349_s21 = scalar_select %p1962_p11, 1, 0 }
  0x18   : > { %s2350_s22 = scalar_select %p1966_p12, 1, 0 }
  0x19   : > { %s2351_s23 = scalar_select %p1970_p13, 1, 0 }
  0x1a   : > { %p1591_p2 = pneg %p1970_p13  ;;  %s273_s25 = sshll.u32 %s1843_s24, 4  ;;  %s274_s25 = int_to_ptr.vmem [resolvable:$true] %s273_s25 }
  0x1b   : > { %p1611_p4 = scmp.lt.s32.totalorder %s1841_s12, 2  ;;  %p2352_p0 = scmp.eq.s32.totalorder %s1931_s13, 0 }
  0x1c   : > { %s1844_s28 = smov [#allocation7]   ;;  %s1674_s14 = scalar_lea.vmem %s274_s25, 32 }
  0x1d   : > { %p1980_p7 = pnand %p1591_p2, %p2352_p0  ;;  %p1986_p3 = pnand %p1611_p4, %p1949_p5 }
  0x1e   : > { %s284_s29 = sshll.u32 %s1844_s28, 4  ;;  %p1675_p9 = scmp.ne.s32.totalorder %s274_s25, %s1674_s14  ;;  %s285_s29 = int_to_ptr.vmem [resolvable:$true] %s284_s29 }
  0x1f   : > { %p1665_p8 = pneg %p1980_p7  ;;  %p1682_p0 = scmp.lt.s32.totalorder %s274_s25, %s274_s25 }
  0x20   : > { %p1683_p1 = scmp.lt.s32.totalorder %s1674_s14, %s1674_s14 }
  0x21   : > { %p1677_p10 = pnand %p1675_p9, %p1665_p8 }
  0x22   : > { %p1684_p12 = por %p1683_p1, %p1682_p0 }
  0x23   : > { %p1678_p2 = pneg %p1677_p10 }
  0x25   : > { %p1685_p11 = pnand %p1684_p12, %p1678_p2 }
  0x27   : > { %1688 = shalt.err (!%p1685_p11)
}
  0x28   : > { %s2355_s1 = sld [smem:[#allocation17_spill]]  ;;  %s310_s19 = sand.u32 1, %s1837_s11  }
  0x29   : > { %s1700_s24 = scalar_lea.vmem %s285_s29, 32  ;;  %p1708_p10 = scmp.lt.s32.totalorder %s285_s29, %s285_s29 }
  0x2a   : > { %p1701_p4 = scmp.ne.s32.totalorder %s285_s29, %s1700_s24  ;;  %p1709_p6 = scmp.lt.s32.totalorder %s1700_s24, %s1700_s24 }
  0x2c   : > { %p1703_p5 = pnand %p1701_p4, %p1665_p8  ;;  %p1710_p1 = por %p1709_p6, %p1708_p10 }
  0x2e   : > { %1594 = dma.hbm_to_vmem [thread:$0]  (!%p1980_p7), %s2355_s1, 32, %s274_s25, [#allocation6]  }
  0x2f   : > { %p1704_p9 = pneg %p1703_p5 }
  0x31   : > { %p1711_p12 = pnand %p1710_p1, %p1704_p9 }
  0x33   : > { %1714 = shalt.err (!%p1711_p12)
}
  0x34   : > { %1597 = dma.hbm_to_vmem [thread:$0]  (!%p1980_p7), %s2331_s2, 32, %s285_s29, [#allocation6]  }
  0x35   : > { %s1537_s25 = sshll.u32 %s310_s19, 5  ;;  %s1574_s16 = sshll.u32 %s1841_s12, 9 }
  0x36   : > { %s2013_s18 = scalar_lea.hbm %s2329_s0, %s1574_s16  ;;  %s314_s24 = scalar_lea.vmem [#allocation2], %s1537_s25 }
  0x37   : > { %s321_s11 = sshll.u32 %s314_s24, 4  ;;  %s2017_s26 = scalar_lea.sflag [#allocation3], %s310_s19  ;;  %s2015_s11 = int_to_ptr.vmem [resolvable:$true] %s321_s11 }
  0x38   : > { %s1715_s28 = scalar_lea.hbm %s2013_s18, 512  ;;  %p1717_p11 = pneg %p1986_p3 }
  0x39   : > { %p1716_p6 = scmp.ne.s32.totalorder %s2013_s18, %s1715_s28  ;;  %s1720_s1 = scalar_lea.hbm %s2329_s0, 1024 }
  0x3a   : > { %p1721_p2 = scmp.lt.s32.totalorder %s2013_s18, %s2329_s0  ;;  %p1722_p0 = scmp.lt.s32.totalorder %s1720_s1, %s1715_s28 }
  0x3b   : > { %p1718_p7 = pnand %p1717_p11, %p1716_p6 }
  0x3c   : > { %p1723_p4 = por %p1722_p0, %p1721_p2 }
  0x3d   : > { %p1719_p8 = pneg %p1718_p7 }
  0x3f   : > { %p1724_p5 = pnand %p1723_p4, %p1719_p8 }
  0x41   : > { %1727 = shalt.err (!%p1724_p5)
}
  0x42   : > { %s1728_s19 = scalar_lea.vmem %s2015_s11, 512  ;;  %s1845_s25 = smov [#allocation2]  }
  0x43   : > { %p1729_p9 = scmp.ne.s32.totalorder %s2015_s11, %s1728_s19  ;;  %s1733_s24 = sshll.u32 %s1845_s25, 4  ;;  %s1734_s24 = int_to_ptr.vmem [resolvable:$false] %s1733_s24 }
  0x44   : > { %s1735_s29 = scalar_lea.vmem %s1734_s24, 1024  ;;  %p1736_p12 = scmp.lt.s32.totalorder %s2015_s11, %s1734_s24 }
  0x45   : > { %p1731_p10 = pnand %p1729_p9, %p1717_p11  ;;  %p1737_p6 = scmp.lt.s32.totalorder %s1735_s29, %s1728_s19 }
  0x47   : > { %p1732_p1 = pneg %p1731_p10  ;;  %p1738_p7 = por %p1737_p6, %p1736_p12 }
  0x49   : > { %p1739_p13 = pnand %p1738_p7, %p1732_p1 }
  0x4b   : > { %1742 = shalt.err (!%p1739_p13)
}
  0x4c   : > { %s1846_s28 = smov 256   ;;  %s1847_s14 = smov 16  }
  0x4d   : > { %1601 = dma.hbm_to_vmem [thread:$0]  (!%p1986_p3), %s2013_s18, 512, %s2015_s11, %s2017_s26, %s1846_s28, %s1846_s28, %s1847_s14  }
  0x4e   : > { %p2356_p11 = scmp.ne.s32.totalorder %s2351_s23, 0 }
  0x4f   : > { %s2041_s1 = sand.u32 (!%p2356_p11), 1, %s1833_s10   ;;  %p2357_p13 = scmp.ne.s32.totalorder (!%p2356_p11), %s2348_s20, 0 }
  0x50   : > { %333 = sbr.rel (%p2356_p11) target bundleno = 658 (0x292), region = 52  ;;  %s1541_s16 = sshll.u32 (!%p2356_p11), %s2041_s1, 5 }
  0x51   : > { %s336_s17 = scalar_lea.sflag (!%p2356_p11), [#allocation3], %s2041_s1  ;;  %s339_s19 = scalar_lea.vmem (!%p2356_p11), [#allocation2], %s1541_s16 }
  0x55   : > { %1812 = dma.done.wait (%p2357_p13), %s336_s17, 512  }
  0x56   : > { %1814 = vsyncadd (%p2357_p13), %s336_s17, 4294966784  ;;  %p2358_p8 = scmp.eq.s32.totalorder %s1931_s13, 0 }
  0x58   : > { %1816 = dma.done.wait (%p2358_p8), [#allocation6], 64   ;;  %p2359_p3 = pmov %p2358_p8 }
  0x59   : > { %v1848_v0 = vmov 0.0   ;;  %v1849_v1 = vmov 0   ;;  %v390_v2 = vld [vmem:[%s339_s19 + $0x18] sm:$0xff]  ;;  %v389_v3 = vld [vmem:[%s339_s19 + $0x10] sm:$0xff]  ;;  %v388_v4 = vld [vmem:[%s339_s19 + $0x8] sm:$0xff]  ;;  %vm398_vm0 = vcmask 130048   ;;  %v477_v36 = vlaneseq }
  0x5a   : > { %1818 = vsyncadd (%p2359_p3), [#allocation6], 4294967232  ;;  %466 = vmatprep.mubr.f32.mxu0 %v1848_v0  ;;  %567 = vmatprep.mubr.f32.mxu1 %v1848_v0  ;;  %v387_v5 = vld [vmem:[%s339_s19] sm:$0xff]  ;;  %v1549_v8 = vld [vmem:[%s2332_s3 + $0x8] sm:$0xf]  ;;  %s1850_s25 = smov 16  }
  0x5b   : > { %1661 = vset.pattern.permute.xlu0 %v1849_v1  ;;  %1662 = vset.pattern.permute.xlu1 %v1849_v1  ;;  %v397_v6 = vld [vmem:[%s2332_s3] sm:$0xf]  ;;  %v1547_v7 = vld [vmem:[%s2332_s3 + $0x4] sm:$0xf]  ;;  %v1551_v9 = vld [vmem:[%s2332_s3 + $0xc] sm:$0xf] }
  0x5c   : > { %430 = vmatprep.subr.mxu0 %v390_v2  ;;  %531 = vmatprep.subr.mxu1 %v390_v2  ;;  %v1553_v10 = vld [vmem:[%s2332_s3 + $0x10] sm:$0xf]  ;;  %v1555_v11 = vld [vmem:[%s2332_s3 + $0x14] sm:$0xf]  ;;  %v1557_v12 = vld [vmem:[%s2332_s3 + $0x18] sm:$0xf] }
  0x5d   : > { %431 = vmatpush1.msra.mxu0 %v389_v3  ;;  %532 = vmatpush1.msra.mxu1 %v389_v3  ;;  %v1559_v13 = vld [vmem:[%s2332_s3 + $0x1c] sm:$0xf]  ;;  %v1265_v14 = vld [vmem:[%s2333_s4] sm:$0xf]  ;;  %s1851_s24 = smov 17   ;;  %s1852_s29 = smov 15  }
  0x5e   : > { %432 = vmatprep.subr.mxu0 %v388_v4  ;;  %533 = vmatprep.subr.mxu1 %v388_v4  ;;  %v1561_v15 = vld [vmem:[%s2332_s3 + $0x20] sm:$0xf]  ;;  %s1853_s28 = smov 1   ;;  %s1854_s14 = smov 127   ;;  %v485_v40 = vshrl.u32 %v477_v36, 7  ;;  %v2133_v47 = vand.u32 127, %v477_v36 }
  0x5f   : > { %433 = vmatpush1.msra.mxu0 %v387_v5  ;;  %534 = vmatpush1.msra.mxu1 %v387_v5  ;;  %s1855_s16 = smov 113   ;;  %s1856_s17 = smov 112   ;;  %v1273_v32 = vld [vmem:[%s2334_s5] sm:$0xf] }
  0x60   : > { %1546 = vmatmul.mubr.msk.f32.vlgmr.msra.gmra.mxu0 %vm398_vm0, %v397_v6  ;;  %1548 = vmatmul.mubr.msk.f32.vlgmr.msra.gmra.mxu1 %vm398_vm0, %v1547_v7  ;;  %s1857_s18 = smov 111   ;;  %v1284_v35 = vld [vmem:[%s2336_s7] sm:$0xff]  ;;  %v2125_v43 = vsub.s32 0, %v485_v40  ;;  %v2127_v44 = vsub.s32 1, %v485_v40  ;;  %vm578_vm6 = vcmp.lt.s32.totalorder %v2133_v47, 16  ;;  %vm479_vm8 = vcmp.lt.s32.totalorder %v2133_v47, 17 }
  0x61   : > { %629 = vmatprep.subr.mxu0 %v390_v2  ;;  %665 = vmatprep.mubr.f32.mxu0 %v1848_v0  ;;  %v2114_v37 = vld [vmem:[#allocation5] sm:$0x3]  ;;  %v2116_v38 = vld [vmem:[#allocation7] sm:$0x3]  ;;  %vm676_vm12 = vcmp.lt.s32.totalorder %v2133_v47, 15  ;;  %vm775_vm15 = vcmp.lt.s32.totalorder %v2133_v47, 1 }
  0x62   : > { %630 = vmatpush1.msra.mxu0 %v389_v3  ;;  %728 = vmatprep.subr.mxu1 %v390_v2  ;;  %vm393_vm1 = vcmp.ge.s32.totalorder %v2114_v37, 1  ;;  %vm395_vm2 = vcmp.ge.s32.totalorder %v2116_v38, 1  ;;  %vm396_vm4 = vcmp.le.s32.totalorder %v2116_v38, 14  ;;  %vm394_vm13 = vcmp.le.s32.totalorder %v2114_v37, 14  ;;  %s1544_s27 = sshll.u32 %s2041_s1, 3  ;;  %s1378_s19 = scalar_lea.sflag [#allocation4], %s2041_s1 }
  0x63   : > { %631 = vmatprep.subr.mxu0 %v388_v4  ;;  %729 = vmatpush1.msra.mxu1 %v389_v3  ;;  %vm482_vm3 = vmand %vm393_vm1, %vm395_vm2  ;;  %v581_v45 = vsel %vm393_vm1, 1, %v1849_v1  ;;  %v778_v55 = vsel %vm395_vm2, 1, %v1849_v1  ;;  %v1151_v40 = vsel %vm394_vm13, 1, %v1849_v1  ;;  %p2388_p0 = scmp.ne.s32.totalorder %s2349_s21, 0 }
  0x64   : > { %632 = vmatpush1.msra.mxu0 %v387_v5  ;;  %730 = vmatprep.subr.mxu1 %v388_v4  ;;  %v483_v46 = vsel %vm482_vm3, 1, %v1849_v1  ;;  %vm679_vm5 = vmand %vm393_vm1, %vm396_vm4  ;;  %v585_v48 = vrot.slane %v581_v45, %v2125_v43  ;;  %v589_v51 = vrot.slane %v581_v45, %v2127_v44  ;;  %v782_v63 = vrot.slane %v778_v55, %v2125_v43 }
  0x65   : > { %1550 = vmatmul.mubr.msk.f32.vlgmr.msra.gmra.mxu0 %vm398_vm0, %v1549_v8  ;;  %731 = vmatpush1.msra.mxu1 %v387_v5  ;;  %v487_v52 = vrot.slane %v483_v46, %v2125_v43  ;;  %v680_v53 = vsel %vm679_vm5, 1, %v1849_v1  ;;  %v491_v54 = vrot.slane %v483_v46, %v2127_v44  ;;  %vm1052_vm3 = vmand %vm394_vm13, %vm395_vm2  ;;  %vm951_vm2 = vcmp.lt.s32.totalorder %v2133_v47, 127 }
  0x66   : > { %764 = vmatprep.mubr.f32.mxu1 %v1848_v0  ;;  %826 = vmatprep.subr.mxu0 %v390_v2  ;;  %vm2144_vm7 = vcmp.eq.s32.totalorder %v585_v48, 1  ;;  %v684_v58 = vrot.slane %v680_v53, %v2125_v43  ;;  %vm2150_vm9 = vcmp.eq.s32.totalorder %v589_v51, 1  ;;  %v688_v62 = vrot.slane %v680_v53, %v2127_v44 }
  0x67   : > { %1552 = vmatmul.mubr.msk.f32.vlgmr.msra.gmra.mxu1 %vm398_vm0, %v1551_v9  ;;  %904 = vmatprep.subr.mxu1 %v390_v2  ;;  %vm2154_vm10 = vcmp.eq.s32.totalorder %v487_v52, 1  ;;  %vm2160_vm11 = vcmp.eq.s32.totalorder %v491_v54, 1  ;;  %vm2176_vm1 = vcmp.eq.s32.totalorder %v782_v63, 1  ;;  %v1159_v51 = vrot.slane %v1151_v40, %v2127_v44 }
  0x68   : > { %827 = vmatpush1.msra.mxu0 %v389_v3  ;;  %905 = vmatpush1.msra.mxu1 %v389_v3  ;;  %vm2167_vm14 = vcmp.eq.s32.totalorder %v684_v58, 1 }
  0x69   : > { %828 = vmatprep.subr.mxu0 %v388_v4  ;;  %906 = vmatprep.subr.mxu1 %v388_v4 }
  0x6a   : > { %829 = vmatpush1.msra.mxu0 %v387_v5  ;;  %862 = vmatprep.mubr.f32.mxu0 %v1848_v0 }
  0x6b   : > { %907 = vmatpush1.msra.mxu1 %v387_v5  ;;  %940 = vmatprep.mubr.f32.mxu1 %v1848_v0 }
  0x6c   : > { %1554 = vmatmul.mubr.msk.f32.vlgmr.msra.gmra.mxu0 %vm398_vm0, %v1553_v10  ;;  %1556 = vmatmul.mubr.msk.f32.vlgmr.msra.gmra.mxu1 %vm398_vm0, %v1555_v11 }
  0x6d   : > { %1002 = vmatprep.subr.mxu0 %v390_v2  ;;  %1038 = vmatprep.mubr.f32.mxu0 %v1848_v0 }
  0x6e   : > { %1003 = vmatpush1.msra.mxu0 %v389_v3  ;;  %1101 = vmatprep.subr.mxu1 %v390_v2 }
  0x6f   : > { %1004 = vmatprep.subr.mxu0 %v388_v4  ;;  %1102 = vmatpush1.msra.mxu1 %v389_v3 }
  0x70   : > { %1005 = vmatpush1.msra.mxu0 %v387_v5  ;;  %1103 = vmatprep.subr.mxu1 %v388_v4 }
  0x71   : > { %1558 = vmatmul.mubr.msk.f32.vlgmr.msra.gmra.mxu0 %vm398_vm0, %v1557_v12  ;;  %1104 = vmatpush1.msra.mxu1 %v387_v5 }
  0x72   : > { %1137 = vmatprep.mubr.f32.mxu1 %v1848_v0  ;;  %1199 = vmatprep.subr.mxu0 %v390_v2  ;;  %v786_v2 = vrot.slane %v778_v55, %v2127_v44 }
  0x73   : > { %1560 = vmatmul.mubr.msk.f32.vlgmr.msra.gmra.mxu1 %vm398_vm0, %v1559_v13  ;;  %1200 = vmatpush1.msra.mxu0 %v389_v3 }
  0x74   : > { %1201 = vmatprep.subr.mxu0 %v388_v4  ;;  %1235 = vmatprep.mubr.f32.mxu0 %v1848_v0  ;;  %vm2192_vm5 = vcmp.eq.s32.totalorder %v786_v2, 1 }
  0x75   : > { %1202 = vmatpush1.msra.mxu0 %v387_v5  ;;  %1268 = vperm.xlu0 %1661, %v1265_v14  }
  0x76   : > { %1562 = vmatmul.mubr.msk.f32.vlgmr.msra.gmra.mxu0 %vm398_vm0, %v1561_v15  ;;  %1365 = vmatprep.mubr.f32.mxu1 %v1848_v0  ;;  %vm2172_vm0 = vcmp.eq.s32.totalorder %v688_v62, 1 }
  0xf0   : > { %v2118_v39 = vpop.permute.xlu0 %1268 }
 0x120   : > { %v468_v16 = vpop.f32.mrf.mxu0  ;;  %v569_v17 = vpop.f32.mrf.mxu1 }
 0x121   : > { %574 = vrot.lane.b32.xlu1 %v569_v17, %s1850_s25  ;;  %473 = vrot.lane.b32.xlu0 %v468_v16, %s1851_s24 }
 0x122   : > { %v470_v18 = vpop.f32.mrf.mxu0  ;;  %v571_v19 = vpop.f32.mrf.mxu1 }
 0x125   : > { %v667_v20 = vpop.f32.mrf.mxu0  ;;  %576 = vrot.lane.b32.xlu1 %v571_v19, %s1850_s25  ;;  %475 = vrot.lane.b32.xlu0 %v470_v18, %s1851_s24  ;;  %s379_s24 = scalar_lea.vmem [#allocation8], %s1544_s27 }
 0x127   : > { %v766_v21 = vpop.f32.mrf.mxu1  ;;  %v669_v22 = vpop.f32.mrf.mxu0 }
 0x129   : > { %672 = vrot.lane.b32.xlu0 %v667_v20, %s1852_s29  ;;  %674 = vrot.lane.b32.xlu1 %v669_v22, %s1852_s29  ;;  %v768_v23 = vpop.f32.mrf.mxu1  ;;  %s1575_s29 = sshll.u32 %s1931_s13, 7 }
 0x12c   : > { %v2104_v24 = vpop.f32.mrf.mxu0  ;;  %v942_v25 = vpop.f32.mrf.mxu1 }
 0x12d   : > { %771 = vrot.lane.b32.xlu0 %v766_v21, %s1853_s28  ;;  %773 = vrot.lane.b32.xlu1 %v768_v23, %s1853_s28  ;;  %v954_v21 = vsel %vm396_vm4, 1, %v1849_v1 }
 0x12e   : > { %v2106_v26 = vpop.f32.mrf.mxu0  ;;  %v944_v27 = vpop.f32.mrf.mxu1  ;;  %v962_v36 = vrot.slane %v954_v21, %v2127_v44 }
 0x131   : > { %v1040_v28 = vpop.f32.mrf.mxu0  ;;  %947 = vrot.lane.b32.xlu0 %v942_v25, %s1854_s14  ;;  %949 = vrot.lane.b32.xlu1 %v944_v27, %s1854_s14 }
 0x133   : > { %v1042_v29 = vpop.f32.mrf.mxu0  ;;  %v1139_v30 = vpop.f32.mrf.mxu1 }
 0x135   : > { %1045 = vrot.lane.b32.xlu0 %v1040_v28, %s1855_s16  ;;  %1047 = vrot.lane.b32.xlu1 %v1042_v29, %s1855_s16  ;;  %v1141_v31 = vpop.f32.mrf.mxu1  ;;  %s1395_s16 = scalar_lea.hbm %s2337_s8, %s1575_s29 }
 0x136   : > { %v1237_v33 = vpop.f32.mrf.mxu0 }
 0x138   : > { %v1239_v34 = vpop.f32.mrf.mxu0 }
 0x139   : > { %1144 = vrot.lane.b32.xlu0 %v1139_v30, %s1856_s17  ;;  %1146 = vrot.lane.b32.xlu1 %v1141_v31, %s1856_s17  ;;  %v1053_v30 = vsel %vm1052_vm3, 1, %v1849_v1  ;;  %vm1290_vm3 = vcmask 31744   ;;  %s1397_s17 = sshll.u32 %s379_s24, 4  ;;  %s1398_s17 = int_to_ptr.vmem [resolvable:$true] %s1397_s17 }
 0x13a   : > { %v1061_v45 = vrot.slane %v1053_v30, %v2127_v44  ;;  %s1743_s11 = scalar_lea.vmem %s1398_s17, 128 }
 0x13b   : > { %p1744_p2 = scmp.ne.s32.totalorder %s1398_s17, %s1743_s11 }
 0x13d   : > { %1276 = vperm.xlu0 %1661, %v1273_v32   ;;  %1242 = vrot.lane.b32.xlu1 %v1237_v33, %s1857_s18  ;;  %v958_v33 = vrot.slane %v954_v21, %v2125_v43  ;;  %p1745_p4 = pnand %p1744_p2, %p2388_p0 }
 0x13f   : > { %p1746_p5 = pneg %p1745_p4 }
 0x141   : > { %1244 = vrot.lane.b32.xlu1 %v1239_v34, %s1857_s18  ;;  %s1858_s18 = smov [#allocation8]  }
 0x142   : > { %s1747_s20 = sshll.u32 %s1858_s18, 4  ;;  %s1748_s20 = int_to_ptr.vmem [resolvable:$false] %s1747_s20 }
 0x143   : > { %s1749_s23 = scalar_lea.vmem %s1748_s20, 256  ;;  %p1750_p9 = scmp.lt.s32.totalorder %s1398_s17, %s1748_s20 }
 0x144   : > { %p1751_p10 = scmp.lt.s32.totalorder %s1749_s23, %s1743_s11 }
 0x145   : > { %1287 = vperm.xlu1 %1662, %v1284_v35  }
 0x146   : > { %p1752_p1 = por %p1751_p10, %p1750_p9 }
 0x148   : > { %p1753_p12 = pnand %p1752_p1, %p1746_p5 }
 0x193   : > { %v575_v41 = vpop.permute.xlu1 %574  ;;  %v474_v42 = vpop.permute.xlu0 %473 }
 0x197   : > { %v577_v49 = vpop.permute.xlu1 %576  ;;  %v476_v50 = vpop.permute.xlu0 %475 }
 0x198   : > { %v579_v3 = vsel %vm578_vm6, %v575_v41, %v577_v49  ;;  %v580_v4 = vsel %vm578_vm6, %v577_v49, %v575_v41  ;;  %v480_v5 = vsel %vm479_vm8, %v474_v42, %v476_v50  ;;  %v481_v6 = vsel %vm479_vm8, %v476_v50, %v474_v42  ;;  %vm1249_vm6 = vmand %vm394_vm13, %vm396_vm4 }
 0x199   : > { %v592_v14 = vsel %vm2144_vm7, %v580_v4, 0.0  ;;  %v593_v15 = vsel %vm2150_vm9, %v579_v3, 0.0  ;;  %v494_v16 = vsel %vm2154_vm10, %v481_v6, 0.0  ;;  %v495_v17 = vsel %vm2160_vm11, %v480_v5, 0.0 }
 0x19a   : > { %v594_v28 = vadd.f32 %v592_v14, %v494_v16  ;;  %v595_v29 = vadd.f32 %v593_v15, %v495_v17  ;;  %v1057_v42 = vrot.slane %v1053_v30, %v2125_v43  ;;  %vm1049_vm7 = vcmp.lt.s32.totalorder %v2133_v47, 113 }
 0x19b   : > { %v673_v57 = vpop.permute.xlu0 %672  ;;  %v675_v59 = vpop.permute.xlu1 %674  ;;  %v1155_v50 = vrot.slane %v1151_v40, %v2125_v43  ;;  %vm2223_vm8 = vcmp.eq.s32.totalorder %v958_v33, 1  ;;  %vm2227_vm9 = vcmp.eq.s32.totalorder %v962_v36, 1  ;;  %vm2235_vm4 = vcmp.eq.s32.totalorder %v1061_v45, 1 }
 0x19c   : > { %v677_v11 = vsel %vm676_vm12, %v673_v57, %v675_v59  ;;  %v678_v12 = vsel %vm676_vm12, %v675_v59, %v673_v57  ;;  %vm2231_vm10 = vcmp.eq.s32.totalorder %v1057_v42, 1  ;;  %vm1148_vm11 = vcmp.lt.s32.totalorder %v2133_v47, 112 }
 0x19d   : > { %v691_v22 = vsel %vm2167_vm14, %v678_v12, 0.0  ;;  %v692_v23 = vsel %vm2172_vm0, %v677_v11, 0.0  ;;  %v1250_v58 = vsel %vm1249_vm6, 1, %v1849_v1  ;;  %vm2251_vm12 = vcmp.eq.s32.totalorder %v1155_v50, 1 }
 0x19e   : > { %v693_v34 = vadd.f32 %v691_v22, %v594_v28  ;;  %v694_v35 = vadd.f32 %v692_v23, %v595_v29  ;;  %vm2255_vm13 = vcmp.eq.s32.totalorder %v1159_v51, 1  ;;  %v1254_v3 = vrot.slane %v1250_v58, %v2125_v43  ;;  %v1283_v29 = vld [vmem:[%s2335_s6] sm:$0xff] }
 0x19f   : > { %v772_v8 = vpop.permute.xlu0 %771  ;;  %v774_v9 = vpop.permute.xlu1 %773  ;;  %v1258_v4 = vrot.slane %v1250_v58, %v2127_v44  ;;  %vm1246_vm14 = vcmp.lt.s32.totalorder %v2133_v47, 111 }
 0x1a0   : > { %v776_v19 = vsel %vm775_vm15, %v772_v8, %v774_v9  ;;  %v777_v20 = vsel %vm775_vm15, %v774_v9, %v772_v8  ;;  %vm1259_vm15 = vcmp.eq.s32.totalorder %v1254_v3, 1 }
 0x1a1   : > { %v789_v31 = vsel %vm2176_vm1, %v777_v20, 0.0  ;;  %v790_v32 = vsel %vm2192_vm5, %v776_v19, 0.0  ;;  %vm1260_vm0 = vcmp.eq.s32.totalorder %v1258_v4, 1  ;;  %vm1294_vm1 = vcmask 1043456  }
 0x1a2   : > { %v791_v48 = vadd.f32 %v789_v31, %v693_v34  ;;  %v792_v49 = vadd.f32 %v790_v32, %v694_v35 }
 0x1a3   : > { %v948_v25 = vpop.permute.xlu0 %947  ;;  %v950_v27 = vpop.permute.xlu1 %949 }
 0x1a4   : > { %v952_v54 = vsel %vm951_vm2, %v948_v25, %v950_v27  ;;  %v953_v55 = vsel %vm951_vm2, %v950_v27, %v948_v25  ;;  %v869_v59 = vadd.f32 %v2104_v24, %v791_v48  ;;  %v870_v60 = vadd.f32 %v2106_v26, %v792_v49 }
 0x1a5   : > { %v965_v63 = vsel %vm2223_vm8, %v952_v54, 0.0  ;;  %v966_v0 = vsel %vm2227_vm9, %v953_v55, 0.0 }
 0x1a6   : > { %v967_v8 = vadd.f32 %v965_v63, %v869_v59  ;;  %v968_v9 = vadd.f32 %v966_v0, %v870_v60 }
 0x1a7   : > { %v1046_v41 = vpop.permute.xlu0 %1045  ;;  %v1048_v46 = vpop.permute.xlu1 %1047 }
 0x1a8   : > { %v1050_v61 = vsel %vm1049_vm7, %v1046_v41, %v1048_v46  ;;  %v1051_v62 = vsel %vm1049_vm7, %v1048_v46, %v1046_v41 }
 0x1a9   : > { %v1064_v5 = vsel %vm2231_vm10, %v1050_v61, 0.0  ;;  %v1065_v6 = vsel %vm2235_vm4, %v1051_v62, 0.0 }
 0x1aa   : > { %v1066_v43 = vadd.f32 %v1064_v5, %v967_v8  ;;  %v1067_v12 = vadd.f32 %v1065_v6, %v968_v9 }
 0x1ab   : > { %v1145_v56 = vpop.permute.xlu0 %1144  ;;  %v1147_v57 = vpop.permute.xlu1 %1146 }
 0x1ac   : > { %v1149_v24 = vsel %vm1148_vm11, %v1145_v56, %v1147_v57  ;;  %v1150_v26 = vsel %vm1148_vm11, %v1147_v57, %v1145_v56 }
 0x1ad   : > { %v1162_v10 = vsel %vm2251_vm12, %v1149_v24, 0.0  ;;  %v1163_v11 = vsel %vm2255_vm13, %v1150_v26, 0.0 }
 0x1ae   : > { %v1164_v13 = vadd.f32 %v1162_v10, %v1066_v43  ;;  %v1165_v14 = vadd.f32 %v1163_v11, %v1067_v12 }
 0x1af   : > { %v1243_v7 = vpop.permute.xlu1 %1242 }
 0x1b3   : > { %v1245_v44 = vpop.permute.xlu1 %1244 }
 0x1b4   : > { %v1247_v15 = vsel %vm1246_vm14, %v1243_v7, %v1245_v44  ;;  %v1248_v16 = vsel %vm1246_vm14, %v1245_v44, %v1243_v7 }
 0x1b5   : > { %v1261_v17 = vsel %vm1259_vm15, %v1247_v15, 0.0  ;;  %v1262_v18 = vsel %vm1260_vm0, %v1248_v16, 0.0 }
 0x1b6   : > { %v1263_v19 = vadd.f32 %v1261_v17, %v1164_v13  ;;  %v1264_v20 = vadd.f32 %v1262_v18, %v1165_v14 }
 0x1b8   : > { %v1277_v21 = vpop.permute.xlu0 %1276  ;;  %v1271_v22 = vmul.f32 %v2118_v39, %v1263_v19  ;;  %v1272_v47 = vmul.f32 %v2118_v39, %v1264_v20 }
 0x1ba   : > { %v1279_v23 = vadd.f32 %v1277_v21, %v1271_v22  ;;  %v1280_v25 = vadd.f32 %v1277_v21, %v1272_v47 }
 0x1bc   : > { %v1281_v27 = vmax.f32 %v1279_v23, 0.0  ;;  %v1282_v28 = vmax.f32 %v1280_v25, 0.0 }
 0x1be   : > { %v1372_v30 = vcombine.low %v1281_v27, %v1282_v28  ;;  %1563 = vmatprep.subr.msk.mxu1 %vm1294_vm1, %v1282_v28 }
 0x1bf   : > { %1564 = vmatpush1.msk.msra.mxu1 %vm1294_vm1, %v1281_v27 }
 0x1c0   : > { %1565 = vmatmul.mubr.msk.f32.vlgmr.msra.gmra.mxu1 %vm1290_vm3, %v1283_v29  ;;  %1374 = vst [vmem:[%s379_s24] sm:$0xff] %v1372_v30 }
 0x1c1   : > { %1756 = shalt.err (!%p1753_p12)
}
 0x1c2   : > { %s1757_s27 = scalar_lea.hbm %s1395_s16, 128  ;;  %s1761_s24 = scalar_lea.hbm %s2337_s8, 256 }
 0x1c3   : > { %p1758_p6 = scmp.ne.s32.totalorder %s1395_s16, %s1757_s27  ;;  %p1762_p13 = scmp.lt.s32.totalorder %s1395_s16, %s2337_s8 }
 0x1c4   : > { %p1763_p8 = scmp.lt.s32.totalorder %s1761_s24, %s1757_s27 }
 0x1c5   : > { %p1759_p7 = pnand %p1758_p6, %p2388_p0 }
 0x1c6   : > { %p1764_p3 = por %p1763_p8, %p1762_p13 }
 0x1c7   : > { %p1760_p11 = pneg %p1759_p7 }
 0x1c9   : > { %p1765_p2 = pnand %p1764_p3, %p1760_p11 }
 0x1cb   : > { %1768 = shalt.err (!%p1765_p2)
}
 0x1cc   : > { %1587 = dma.vmem_to_hbm [thread:$0]  (%p2388_p0), %s1398_s17, 128, %s1395_s16, %s1378_s19   ;;  %v1288_v39 = vpop.permute.xlu1 %1287 }
 0x1cd   : > { %s1545_s14 = sshll.u32 %s2041_s1, 4  ;;  %s1576_s11 = sshll.u32 %s1931_s13, 8 }
 0x1ce   : > { %s386_s18 = scalar_lea.vmem [#allocation9], %s1545_s14  ;;  %s1409_s26 = scalar_lea.hbm %s2338_s9, %s1576_s11 }
 0x1cf   : > { %s1411_s20 = sshll.u32 %s386_s18, 4  ;;  %s1383_s25 = scalar_lea.sflag [#allocation10], %s2041_s1  ;;  %s1412_s20 = int_to_ptr.vmem [resolvable:$true] %s1411_s20 }
 0x1d0   : > { %s1769_s24 = scalar_lea.vmem %s1412_s20, 256  ;;  %s1859_s16 = smov [#allocation9]  }
 0x1d1   : > { %p1770_p4 = scmp.ne.s32.totalorder %s1412_s20, %s1769_s24  ;;  %s1773_s13 = sshll.u32 %s1859_s16, 4  ;;  %s1774_s13 = int_to_ptr.vmem [resolvable:$false] %s1773_s13 }
 0x1d2   : > { %s1775_s17 = scalar_lea.vmem %s1774_s13, 512  ;;  %p1776_p10 = scmp.lt.s32.totalorder %s1412_s20, %s1774_s13 }
 0x1d3   : > { %p1771_p5 = pnand %p1770_p4, %p2388_p0  ;;  %p1777_p1 = scmp.lt.s32.totalorder %s1775_s17, %s1769_s24 }
 0x1d5   : > { %p1772_p9 = pneg %p1771_p5  ;;  %p1778_p12 = por %p1777_p1, %p1776_p10 }
 0x1d7   : > { %p1779_p6 = pnand %p1778_p12, %p1772_p9 }
 0x280   : > { %v1367_v31 = vpop.f32.mrf.mxu1 }
 0x281   : > { %v1368_v32 = vadd.f32 %v1367_v31, %v1288_v39 }
 0x282   : > { %v1369_v33 = vpop.f32.mrf.mxu1 }
 0x283   : > { %1375 = vst [vmem:[%s386_s18] sm:$0xff] %v1368_v32  ;;  %v1370_v34 = vadd.f32 %v1369_v33, %v1288_v39 }
 0x285   : > { %1376 = vst [vmem:[%s386_s18 + $0x8] sm:$0xff] %v1370_v34 }
 0x286   : > { %1782 = shalt.err (!%p1779_p6)
}
 0x287   : > { %s1783_s19 = scalar_lea.hbm %s1409_s26, 256  ;;  %s1787_s28 = scalar_lea.hbm %s2338_s9, 512 }
 0x288   : > { %p1784_p7 = scmp.ne.s32.totalorder %s1409_s26, %s1783_s19  ;;  %p1788_p8 = scmp.lt.s32.totalorder %s1409_s26, %s2338_s9 }
 0x289   : > { %p1789_p3 = scmp.lt.s32.totalorder %s1787_s28, %s1783_s19 }
 0x28a   : > { %p1785_p11 = pnand %p1784_p7, %p2388_p0 }
 0x28b   : > { %p1790_p2 = por %p1789_p3, %p1788_p8 }
 0x28c   : > { %p1786_p13 = pneg %p1785_p11 }
 0x28e   : > { %p1791_p4 = pnand %p1790_p2, %p1786_p13 }
 0x290   : > { %1794 = shalt.err (!%p1791_p4)
}
 0x291   : > { %1588 = dma.vmem_to_hbm [thread:$0]  (%p2388_p0), %s1412_s20, 256, %s1409_s26, %s1383_s25  }
 0x292 PF: > { %s1423_s18 = sand.u32 1, %s1829_s30   ;;  %p2389_p5 = scmp.ne.s32.totalorder %s2350_s22, 0 }
 0x293   : > { %p2390_p9 = scmp.ge.s32.totalorder %s1841_s12, 2  ;;  %s1424_s23 = scalar_lea.sflag [#allocation4], %s1423_s18 }
 0x295   : > { %p1603_p10 = pnand %p2390_p9, %p2389_p5 }
 0x297   : > { %p1604_p1 = pneg %p1603_p10 }
 0x299   : > { %1820 = dma.done.wait (%p1604_p1), %s1424_s23, 128  }
 0x29a   : > { %1822 = vsyncadd (%p1604_p1), %s1424_s23, 4294967168  ;;  %s1433_s27 = scalar_lea.sflag [#allocation10], %s1423_s18 }
 0x29b   : > { %1824 = dma.done.wait (%p1604_p1), %s1433_s27, 256  }
 0x29c   : > { %1826 = vsyncadd (%p1604_p1), %s1433_s27, 4294967040  ;;  %s2391_s24 = sld [smem:[#allocation15_spill]]  ;;  %p27_p0 = scmp.ge.s32.totalorder %s1935_s15, 4  }
 0x29d   : > { %s2392_s11 = sld [smem:[#allocation16_spill]]  ;;  %s2393_s30 = smov %s1833_s10 }
 0x29e   : > { %s2395_s12 = smov %s1935_s15  ;;  %29 = sbr.rel (!%p27_p0) target bundleno = 10 (0xa), region = 130 }
 0x2a2   : > { %s2394_s10 = smov %s2391_s24 }
 0x2a3   :  { %1438 = vsyncpa [#allocation3], 1 }
 0x2a4   :  { %1440 = vsyncpa [#allocation3 + $0x1], 1 }
 0x2a5   :  { %1441 = vsyncpa [#allocation6], 1 }
 0x2a6   :  { %1442 = vsyncpa [#allocation4], 1 }
 0x2a7   :  { %1444 = vsyncpa [#allocation4 + $0x1], 1 }
 0x2a8   :  { %1445 = vsyncpa [#allocation10], 1 }
 0x2a9   :  { %1447 = vsyncpa [#allocation10 + $0x1], 1 }

</bundles_post_ra>
